<compile_context>
chip_gen: v7x
topology: tpu7x:2x2x1
jax: 0.10.0
libtpu: 0.0.40
codegen_flags: <defaults>
</compile_context>

<pallas_src>
import jax
import jax.numpy as jnp
from jax.experimental import pallas as pl
from jax.experimental.pallas import tpu as pltpu


def _round_up(x, m):
    return ((x + m - 1) // m) * m


def _skipgram_fwd_kernel(ctx_ref, emb_ref, wt_ref, b_ref, out_ref, latent_ref):
    # Grid: (batch tiles i, vocab tiles j); j is the inner (fastest) axis.
    j = pl.program_id(1)

    @pl.when(j == 0)
    def _():
        # Fused embedding gather: one-hot(ctx) @ table on the MXU.
        # onehot has exact 0/1 entries, so this selects rows without a
        # dynamic-gather op; result cached in VMEM for all vocab tiles.
        tb = ctx_ref.shape[0]
        vp = emb_ref.shape[0]
        rows = jax.lax.broadcasted_iota(jnp.int32, (tb, vp), 1)        # (TB, Vp)
        onehot = jnp.where(rows == ctx_ref[...], 1.0, 0.0).astype(jnp.float32)
        latent_ref[...] = jnp.dot(
            onehot, emb_ref[...].astype(jnp.float32),
            preferred_element_type=jnp.float32)                        # (TB, Dp)

    # Vocab projection tile on the MXU, f32 accumulate, lane-dense output.
    logits = jnp.dot(latent_ref[...], wt_ref[...].astype(jnp.float32),
                     preferred_element_type=jnp.float32)               # (TB, TV)
    out_ref[...] = logits + b_ref[...].astype(jnp.float32)


def skipgram_forward(context, emb_table, out_weight, out_bias,
                     *, batch_tile=256, vocab_tile=512):
    """Pallas forward of SkipGramModel: logits = Embedding(ctx) @ W.T + b.

    context   : int (B,) or (B, 1) token ids
    emb_table : (V, D)  nn.Embedding weight           (f32 or bf16)
    out_weight: (V, D)  nn.Linear weight (PyTorch layout)
    out_bias  : (V,)    nn.Linear bias
    returns   : (B, V) float32 logits
    """
    if context.ndim == 2:                      # context.squeeze(-1)
        context = context[:, 0]
    context = context.astype(jnp.int32)
    B = context.shape[0]
    V, D = emb_table.shape

    # Lane-dense padding: last dims to multiples of 128 (zero pad is neutral
    # for the dot products; padded vocab columns are sliced off at the end).
    Dp = _round_up(D, 128)
    Vp = _round_up(V, 128)
    TV = Vp if Vp <= vocab_tile else vocab_tile
    Vp = _round_up(Vp, TV)
    TB = min(_round_up(max(B, 1), 8), batch_tile)
    Bp = _round_up(B, TB)

    emb_p = jnp.pad(emb_table, ((0, Vp - V), (0, Dp - D)))
    wt_p = jnp.pad(out_weight.T, ((0, Dp - D), (0, Vp - V)))
    b_p = jnp.pad(out_bias.astype(jnp.float32), (0, Vp - V)).reshape(1, Vp)
    ctx_p = jnp.pad(context, (0, Bp - B)).reshape(Bp, 1)

    grid = (Bp // TB, Vp // TV)

    # TODO(synk): for very large vocab the in-VMEM table / one-hot gather should
    # be replaced by a scalar-prefetch + pl.Element DMA row gather.
    logits = pl.pallas_call(
        _skipgram_fwd_kernel,
        out_shape=jax.ShapeDtypeStruct((Bp, Vp), jnp.float32),
        grid_spec=pltpu.PrefetchScalarGridSpec(
            num_scalar_prefetch=0,
            grid=grid,
            in_specs=[
                pl.BlockSpec((TB, 1), lambda i, j: (i, 0)),    # context ids
                pl.BlockSpec((Vp, Dp), lambda i, j: (0, 0)),   # embedding table (resident)
                pl.BlockSpec((Dp, TV), lambda i, j: (0, j)),   # linear weight tile
                pl.BlockSpec((1, TV), lambda i, j: (0, j)),    # bias tile
            ],
            out_specs=pl.BlockSpec((TB, TV), lambda i, j: (i, j)),
            scratch_shapes=[pltpu.VMEM((TB, Dp), jnp.float32)],  # cached latent
        ),
        compiler_params=pltpu.CompilerParams(
            dimension_semantics=("parallel", "arbitrary"),
            vmem_limit_bytes=32 * 1024 * 1024,   # safe on v7x; raise on v5e/v6e for bigger tiles
        ),
    )(ctx_p, emb_p, wt_p, b_p)

    return logits[:B, :V]


def skipgram_forward_ref(context, emb_table, out_weight, out_bias):
    """Plain JAX reference mirroring the PyTorch forward."""
    if context.ndim == 2:
        context = context[:, 0]
    latent = jnp.take(emb_table, context, axis=0)
    return jnp.dot(latent, out_weight.T) + out_bias


if __name__ == "__main__":
    key = jax.random.PRNGKey(0)
    k_emb, k_w, k_b, k_ctx = jax.random.split(key, 4)

    vocab_size = 50
    emb_dim = 100          # module default; padded to 128 inside the wrapper
    batch = 8

    # torch.nn.Embedding init: N(0, 1); torch.nn.Linear init: U(-1/sqrt(D), 1/sqrt(D))
    bound = 1.0 / (emb_dim ** 0.5)
    emb_table = jax.random.normal(k_emb, (vocab_size, emb_dim), dtype=jnp.float32)
    out_weight = jax.random.uniform(k_w, (vocab_size, emb_dim), jnp.float32,
                                    minval=-bound, maxval=bound)
    out_bias = jax.random.uniform(k_b, (vocab_size,), jnp.float32,
                                  minval=-bound, maxval=bound)
    context = jax.random.randint(k_ctx, (batch, 1), 0, vocab_size, dtype=jnp.int32)

    logits = jax.block_until_ready(
        skipgram_forward(context, emb_table, out_weight, out_bias))
    ref = jax.block_until_ready(
        skipgram_forward_ref(context, emb_table, out_weight, out_bias))

    assert logits.shape == (batch, vocab_size), logits.shape
    # Tolerance covers MXU f32 multi-pass matmul vs XLA reduction-order/precision
    # differences; values here are O(0.3).
    assert jnp.allclose(logits, ref, rtol=2e-2, atol=2e-2), (
        float(jnp.max(jnp.abs(logits - ref))))
    print("KERNEL_OK")
</pallas_src>

<mosaic_0001>
module attributes {stable_mosaic.version = 11 : i64} {
  func.func @_skipgram_fwd_kernel(%arg0: i32, %arg1: i32, %arg2: memref<8x1xi32, #tpu.memory_space<vmem>>, %arg3: memref<128x128xf32, #tpu.memory_space<vmem>>, %arg4: memref<128x128xf32, #tpu.memory_space<vmem>>, %arg5: memref<1x128xf32, #tpu.memory_space<vmem>>, %arg6: memref<8x128xf32, #tpu.memory_space<vmem>>, %arg7: memref<8x128xf32, #tpu.memory_space<vmem>>) attributes {dimension_semantics = [#tpu.dimension_semantics<parallel>, #tpu.dimension_semantics<arbitrary>], iteration_bounds = array<i64: 1, 1>, scalar_prefetch = 0 : i64, scratch_operands = 1 : i64, tpu.core_type = #tpu.core_type<tc>, window_params = [{transform_indices = @transform_0, window_bounds = array<i64: 8, 1>}, {pipeline_mode = #tpu.pipeline_mode<synchronous>, transform_indices = @transform_1, window_bounds = array<i64: 128, 128>}, {transform_indices = @transform_2, window_bounds = array<i64: 128, 128>}, {transform_indices = @transform_3, window_bounds = array<i64: 1, 128>}, {transform_indices = @transform_4, window_bounds = array<i64: 8, 128>}]} {
    %c0_i32 = arith.constant 0 : i32
    %0 = arith.cmpi eq, %arg1, %c0_i32 : i32
    %1 = arith.extui %0 : i1 to i32
    %c0_i32_0 = arith.constant 0 : i32
    %2 = arith.cmpi ne, %1, %c0_i32_0 : i32
    scf.if %2 {
      %10 = tpu.iota {dimensions = array<i32: 1>} : vector<8x128xi32>
      %c0_8 = arith.constant 0 : index
      %c0_9 = arith.constant 0 : index
      %11 = vector.load %arg2[%c0_8, %c0_9] : memref<8x1xi32, #tpu.memory_space<vmem>>, vector<8x1xi32>
      %12 = vector.broadcast %11 : vector<8x1xi32> to vector<8x128xi32>
      %13 = arith.cmpi eq, %10, %12 : vector<8x128xi32>
      %cst_10 = arith.constant 1.000000e+00 : f32
      %cst_11 = arith.constant 0.000000e+00 : f32
      %14 = vector.broadcast %cst_10 : f32 to vector<8x128xf32>
      %15 = vector.broadcast %cst_11 : f32 to vector<8x128xf32>
      %16 = arith.select %13, %14, %15 : vector<8x128xi1>, vector<8x128xf32>
      %c0_12 = arith.constant 0 : index
      %c0_13 = arith.constant 0 : index
      %17 = vector.load %arg3[%c0_12, %c0_13] : memref<128x128xf32, #tpu.memory_space<vmem>>, vector<128x128xf32>
      %cst_14 = arith.constant dense<0.000000e+00> : vector<8x128xf32>
      %18 = tpu.matmul %16, %17, %cst_14 {dimension_numbers = #tpu.dot_dimension_numbers<[1], [0], [0], [1], [0, 0, 1, 1], [], []>} : vector<8x128xf32>, vector<128x128xf32>, vector<8x128xf32> -> vector<8x128xf32>
      %c0_15 = arith.constant 0 : index
      %c0_16 = arith.constant 0 : index
      %19 = vector.load %arg7[%c0_15, %c0_16] : memref<8x128xf32, #tpu.memory_space<vmem>>, vector<8x128xf32>
      tpu.vector_store %arg7[%c0_15, %c0_16], %18 {strides = array<i32>} : memref<8x128xf32, #tpu.memory_space<vmem>>, vector<8x128xf32>,
    } else {
    }
    %c0 = arith.constant 0 : index
    %c0_1 = arith.constant 0 : index
    %3 = vector.load %arg7[%c0, %c0_1] : memref<8x128xf32, #tpu.memory_space<vmem>>, vector<8x128xf32>
    %c0_2 = arith.constant 0 : index
    %c0_3 = arith.constant 0 : index
    %4 = vector.load %arg4[%c0_2, %c0_3] : memref<128x128xf32, #tpu.memory_space<vmem>>, vector<128x128xf32>
    %cst = arith.constant dense<0.000000e+00> : vector<8x128xf32>
    %5 = tpu.matmul %3, %4, %cst {dimension_numbers = #tpu.dot_dimension_numbers<[1], [0], [0], [1], [0, 0, 1, 1], [], []>} : vector<8x128xf32>, vector<128x128xf32>, vector<8x128xf32> -> vector<8x128xf32>
    %c0_4 = arith.constant 0 : index
    %c0_5 = arith.constant 0 : index
    %6 = vector.load %arg5[%c0_4, %c0_5] : memref<1x128xf32, #tpu.memory_space<vmem>>, vector<1x128xf32>
    %7 = vector.broadcast %6 : vector<1x128xf32> to vector<8x128xf32>
    %8 = arith.addf %5, %7 : vector<8x128xf32>
    %c0_6 = arith.constant 0 : index
    %c0_7 = arith.constant 0 : index
    %9 = vector.load %arg6[%c0_6, %c0_7] : memref<8x128xf32, #tpu.memory_space<vmem>>, vector<8x128xf32>
    tpu.vector_store %arg6[%c0_6, %c0_7], %8 {strides = array<i32>} : memref<8x128xf32, #tpu.memory_space<vmem>>, vector<8x128xf32>,
    return
  }
  func.func @transform_0(%arg0: i32, %arg1: i32) -> (i32, i32) {
    %c0_i32 = arith.constant 0 : i32
    %c0_i32_0 = arith.constant 0 : i32
    return %arg0, %c0_i32 : i32, i32
  }
  func.func @transform_1(%arg0: i32, %arg1: i32) -> (i32, i32) {
    %c0_i32 = arith.constant 0 : i32
    %c0_i32_0 = arith.constant 0 : i32
    %c0_i32_1 = arith.constant 0 : i32
    return %c0_i32, %c0_i32_0 : i32, i32
  }
  func.func @transform_2(%arg0: i32, %arg1: i32) -> (i32, i32) {
    %c0_i32 = arith.constant 0 : i32
    %c0_i32_0 = arith.constant 0 : i32
    return %c0_i32, %arg1 : i32, i32
  }
  func.func @transform_3(%arg0: i32, %arg1: i32) -> (i32, i32) {
    %c0_i32 = arith.constant 0 : i32
    %c0_i32_0 = arith.constant 0 : i32
    return %c0_i32, %arg1 : i32, i32
  }
  func.func @transform_4(%arg0: i32, %arg1: i32) -> (i32, i32) {
    %c0_i32 = arith.constant 0 : i32
    return %arg0, %arg1 : i32, i32
  }
}

</mosaic_0001>

<bundles_post_ra>
// kernel: tpu_custom_call.1
= control target key start
LH: loop header
LB: loop body
LE: loop exit
PB: predicated region body
PF: predicated region fallthrough
CT: control target
= control target key end

     0   :  { %9 = vsyncpa [#allocation4], 0  ;;  %s586_s0 = inlined_call_operand.vmem [shape: s32[8,1], index: 0, kind: input, shape index: {}]   ;;  %s587_s1 = inlined_call_operand.hbm [shape: f32[128,128], index: 1, kind: input, shape index: {}]   ;;  %s588_s2 = inlined_call_operand.hbm [shape: f32[128,128], index: 2, kind: input, shape index: {}]   ;;  %s589_s3 = inlined_call_operand.vmem [shape: f32[1,128], index: 3, kind: input, shape index: {}]   ;;  %s590_s4 = inlined_call_operand.hbm [shape: f32[8,128], index: 4, kind: output, shape index: {}]  }
   0x1   :  { %10 = vsyncpa [#allocation7], 0 }
   0x2   :  { %11 = vsyncpa [#allocation5], 0  ;;  %s493_s15 = smov [#allocation3]   ;;  %s421_s19 = scalar_lea.hbm %s587_s1, 2048 }
   0x3   :  { %s19_s16 = sshll.u32 %s493_s15, 4  ;;  %p422_p0 = scmp.ne.s32.totalorder %s587_s1, %s421_s19  ;;  %s20_s16 = int_to_ptr.vmem [resolvable:$true] %s19_s16 }
   0x4   :  { %p425_p1 = scmp.lt.u32.totalorder %s421_s19, %s587_s1 }
   0x6   :  { %p427_p2 = pnand %p425_p1, %p422_p0 }
   0x8   :  { %430 = shalt.err (!%p427_p2)
}
   0x9   :  { %s431_s24 = scalar_lea.vmem %s20_s16, 2048  ;;  %p436_p4 = scmp.lt.s32.totalorder %s20_s16, %s20_s16 }
   0xa   :  { %p432_p3 = scmp.ne.s32.totalorder %s20_s16, %s431_s24  ;;  %p437_p5 = scmp.lt.s32.totalorder %s431_s24, %s431_s24 }
   0xc   :  { %p438_p6 = por %p437_p5, %p436_p4 }
   0xe   :  { %p439_p7 = pnand %p438_p6, %p432_p3 }
  0x10   :  { %442 = shalt.err (!%p439_p7)
}
  0x11   :  { %s494_s25 = smov 128   ;;  %s495_s26 = smov 8  }
  0x12   :  { %25 = dma.hbm_to_vmem [thread:$0]  %s587_s1, 2048, %s20_s16, [#allocation4], %s494_s25, %s494_s25, %s495_s26  }
  0x13   :  { %s496_s29 = smov [#allocation6]   ;;  %s443_s7 = scalar_lea.hbm %s588_s2, 2048 }
  0x14   :  { %s31_s30 = sshll.u32 %s496_s29, 4  ;;  %p444_p8 = scmp.ne.s32.totalorder %s588_s2, %s443_s7  ;;  %s32_s30 = int_to_ptr.vmem [resolvable:$true] %s31_s30 }
  0x15   :  { %p447_p9 = scmp.lt.u32.totalorder %s443_s7, %s588_s2 }
  0x17   :  { %p449_p10 = pnand %p447_p9, %p444_p8 }
  0x19   :  { %452 = shalt.err (!%p449_p10)
}
  0x1a   :  { %s453_s12 = scalar_lea.vmem %s32_s30, 2048  ;;  %p458_p12 = scmp.lt.s32.totalorder %s32_s30, %s32_s30 }
  0x1b   :  { %p454_p11 = scmp.ne.s32.totalorder %s32_s30, %s453_s12  ;;  %p459_p13 = scmp.lt.s32.totalorder %s453_s12, %s453_s12 }
  0x1d   :  { %p460_p0 = por %p459_p13, %p458_p12 }
  0x1f   :  { %p461_p1 = pnand %p460_p0, %p454_p11 }
  0x21   :  { %464 = shalt.err (!%p461_p1)
}
  0x22   :  { %37 = dma.hbm_to_vmem [thread:$0]  %s588_s2, 2048, %s32_s30, [#allocation7], %s494_s25, %s494_s25, %s495_s26  }
  0x23   :  { %487 = dma.done.wait [#allocation4], 2048  }
  0x24   :  { %488 = vsyncadd [#allocation4], 4294965248 }
  0x25   :  { %489 = dma.done.wait [#allocation7], 2048  }
  0x26   :  { %490 = vsyncadd [#allocation7], 4294965248  ;;  %v497_v0 = vmov 0   ;;  %v498_v1 = vmov 0.0|0.0   ;;  %v52_v2 = vld [vmem:[%s586_s0] sm:$0xff]  ;;  %v58_v3 = vld [vmem:[#allocation3] sm:$0xff]  ;;  %v50_v52 = vlaneseq }
  0x27   :  { %420 = vset.pattern.permute.xlu0 %v497_v0  ;;  %362 = vmatprep.subr.bf16.mxu0 %v498_v1  ;;  %v59_v4 = vld [vmem:[#allocation3 + $0x8] sm:$0xff]  ;;  %v60_v6 = vld [vmem:[#allocation3 + $0x10] sm:$0xff]  ;;  %v61_v7 = vld [vmem:[#allocation3 + $0x18] sm:$0xff]  ;;  %vm499_vm0 = vmmov 0   ;;  %v500_v8 = vmov 0.0   ;;  %v501_v55 = vmov 1.0  }
  0x28   :  { %386 = vmatprep.subr.bf16.mxu1 %v498_v1  ;;  %54 = vperm.xlu0 %420, %v52_v2   ;;  %v363_v5 = vpack.c.bf16 %v59_v4, %v58_v3  ;;  %v366_v9 = vpack.c.bf16 %v61_v7, %v60_v6  ;;  %v62_v10 = vld [vmem:[#allocation3 + $0x20] sm:$0xff]  ;;  %v63_v11 = vld [vmem:[#allocation3 + $0x28] sm:$0xff]  ;;  %v148_v14 = vld [vmem:[#allocation6 + $0x10] sm:$0xff]  ;;  %v51_v53 = vand.u32 127, %v50_v52  ;;  %s502_s16 = smov [#allocation8]  }
  0x29   :  { %324 = vmatprep.mubr.msk.f32.mxu0 %vm499_vm0, %v500_v8  ;;  %359 = vmatprep.mubr.msk.f32.mxu1 %vm499_vm0, %v500_v8  ;;  %v146_v12 = vld [vmem:[#allocation6] sm:$0xff]  ;;  %v147_v13 = vld [vmem:[#allocation6 + $0x8] sm:$0xff]  ;;  %v149_v15 = vld [vmem:[#allocation6 + $0x18] sm:$0xff]  ;;  %v369_v16 = vpack.c.bf16 %v63_v11, %v62_v10  ;;  %s246_s17 = sshll.u32 %s502_s16, 4  ;;  %s247_s17 = int_to_ptr.vmem [resolvable:$true] %s246_s17 }
  0x2a   :  { %364 = vmatpush3.bf16.msra.mxu0 %v363_v5  ;;  %v387_v17 = vpack.c.bf16 %v147_v13, %v146_v12  ;;  %v64_v18 = vld [vmem:[#allocation3 + $0x30] sm:$0xff]  ;;  %v65_v19 = vld [vmem:[#allocation3 + $0x38] sm:$0xff]  ;;  %v390_v20 = vpack.c.bf16 %v149_v15, %v148_v14  ;;  %v150_v21 = vld [vmem:[#allocation6 + $0x20] sm:$0xff]  ;;  %s465_s18 = scalar_lea.vmem %s247_s17, 128  ;;  %p470_p3 = scmp.lt.s32.totalorder %s247_s17, %s247_s17 }
  0x2b   :  { %365 = vmatprep.subr.bf16.mxu0 %v498_v1  ;;  %v151_v22 = vld [vmem:[#allocation6 + $0x28] sm:$0xff]  ;;  %v372_v23 = vpack.c.bf16 %v65_v19, %v64_v18  ;;  %v66_v24 = vld [vmem:[#allocation3 + $0x40] sm:$0xff]  ;;  %v152_v27 = vld [vmem:[#allocation6 + $0x30] sm:$0xff]  ;;  %p466_p2 = scmp.ne.s32.totalorder %s247_s17, %s465_s18  ;;  %p471_p4 = scmp.lt.s32.totalorder %s465_s18, %s465_s18 }
  0x2c   :  { %388 = vmatpush3.bf16.msra.mxu1 %v387_v17  ;;  %v67_v25 = vld [vmem:[#allocation3 + $0x48] sm:$0xff]  ;;  %v393_v26 = vpack.c.bf16 %v151_v22, %v150_v21  ;;  %v153_v28 = vld [vmem:[#allocation6 + $0x38] sm:$0xff]  ;;  %v68_v30 = vld [vmem:[#allocation3 + $0x50] sm:$0xff] }
  0x2d   :  { %389 = vmatprep.subr.bf16.mxu1 %v498_v1  ;;  %v375_v29 = vpack.c.bf16 %v67_v25, %v66_v24  ;;  %v69_v31 = vld [vmem:[#allocation3 + $0x58] sm:$0xff]  ;;  %v396_v32 = vpack.c.bf16 %v153_v28, %v152_v27  ;;  %v154_v33 = vld [vmem:[#allocation6 + $0x40] sm:$0xff]  ;;  %v155_v34 = vld [vmem:[#allocation6 + $0x48] sm:$0xff]  ;;  %p472_p5 = por %p471_p4, %p470_p3 }
  0x2e   :  { %367 = vmatpush3.bf16.msra.mxu0 %v366_v9  ;;  %v378_v35 = vpack.c.bf16 %v69_v31, %v68_v30  ;;  %v70_v36 = vld [vmem:[#allocation3 + $0x60] sm:$0xff]  ;;  %v71_v37 = vld [vmem:[#allocation3 + $0x68] sm:$0xff]  ;;  %v399_v38 = vpack.c.bf16 %v155_v34, %v154_v33  ;;  %v156_v39 = vld [vmem:[#allocation6 + $0x50] sm:$0xff] }
  0x2f   :  { %368 = vmatprep.subr.bf16.mxu0 %v498_v1  ;;  %v157_v40 = vld [vmem:[#allocation6 + $0x58] sm:$0xff]  ;;  %v381_v41 = vpack.c.bf16 %v71_v37, %v70_v36  ;;  %v72_v42 = vld [vmem:[#allocation3 + $0x70] sm:$0xff]  ;;  %v158_v45 = vld [vmem:[#allocation6 + $0x60] sm:$0xff]  ;;  %p473_p6 = pnand %p472_p5, %p466_p2 }
  0x30   :  { %391 = vmatpush3.bf16.msra.mxu1 %v390_v20  ;;  %v73_v43 = vld [vmem:[#allocation3 + $0x78] sm:$0xff]  ;;  %v402_v44 = vpack.c.bf16 %v157_v40, %v156_v39  ;;  %v159_v46 = vld [vmem:[#allocation6 + $0x68] sm:$0xff]  ;;  %v160_v49 = vld [vmem:[#allocation6 + $0x70] sm:$0xff] }
  0x31   :  { %392 = vmatprep.subr.bf16.mxu1 %v498_v1  ;;  %v384_v47 = vpack.c.bf16 %v73_v43, %v72_v42  ;;  %v405_v48 = vpack.c.bf16 %v159_v46, %v158_v45  ;;  %v161_v50 = vld [vmem:[#allocation6 + $0x78] sm:$0xff]  ;;  %v257_v58 = vld [vmem:[%s589_s3] ss:$0 sm:$0xff] }
  0x32   :  { %370 = vmatpush3.bf16.msra.mxu0 %v369_v16  ;;  %v408_v51 = vpack.c.bf16 %v161_v50, %v160_v49 }
  0x33   :  { %371 = vmatprep.subr.bf16.mxu0 %v498_v1 }
  0x34   :  { %394 = vmatpush3.bf16.msra.mxu1 %v393_v26 }
  0x35   :  { %395 = vmatprep.subr.bf16.mxu1 %v498_v1 }
  0x36   :  { %373 = vmatpush3.bf16.msra.mxu0 %v372_v23 }
  0x37   :  { %374 = vmatprep.subr.bf16.mxu0 %v498_v1 }
  0x38   :  { %397 = vmatpush3.bf16.msra.mxu1 %v396_v32 }
  0x39   :  { %398 = vmatprep.subr.bf16.mxu1 %v498_v1 }
  0x3a   :  { %376 = vmatpush3.bf16.msra.mxu0 %v375_v29 }
  0x3b   :  { %377 = vmatprep.subr.bf16.mxu0 %v498_v1 }
  0x3c   :  { %400 = vmatpush3.bf16.msra.mxu1 %v399_v38 }
  0x3d   :  { %401 = vmatprep.subr.bf16.mxu1 %v498_v1 }
  0x3e   :  { %379 = vmatpush3.bf16.msra.mxu0 %v378_v35 }
  0x3f   :  { %380 = vmatprep.subr.bf16.mxu0 %v498_v1 }
  0x40   :  { %403 = vmatpush3.bf16.msra.mxu1 %v402_v44 }
  0x41   :  { %404 = vmatprep.subr.bf16.mxu1 %v498_v1 }
  0x42   :  { %382 = vmatpush3.bf16.msra.mxu0 %v381_v41 }
  0x43   :  { %383 = vmatprep.subr.bf16.mxu0 %v498_v1 }
  0x44   :  { %406 = vmatpush3.bf16.msra.mxu1 %v405_v48 }
  0x45   :  { %407 = vmatprep.subr.bf16.mxu1 %v498_v1 }
  0x46   :  { %385 = vmatpush3.bf16.msra.mxu0 %v384_v47 }
  0x48   :  { %409 = vmatpush3.bf16.msra.mxu1 %v408_v51 }
  0xa7   :  { %v55_v54 = vpop.permute.xlu0 %54 }
  0xa8   :  { %vm56_vm1 = vcmp.eq.s32.totalorder %v51_v53, %v55_v54 }
  0xa9   :  { %325 = vmatmul.mubr.msk.f32.vlgmr.msra.gmra.mrb[0].mxu0 %vm56_vm1, %v501_v55 }
 0x17c   :  { %v140_v56 = vpop.f32.mrb[0].mxu0 }
 0x17d   :  { %v326_v57 = vpop.f32.mrb[1].mxu0  ;;  %360 = vmatmul.mubr.f32.vlgmr.msra.gmra.mrb[0].mxu1 %v140_v56 }
 0x250   :  { %v235_v59 = vpop.f32.mrb[0].mxu1 }
 0x251   :  { %v236_v60 = vadd.f32 %v257_v58, %v235_v59  ;;  %v361_v61 = vpop.f32.mrb[1].mxu1 }
 0x253   :  { %239 = vst [vmem:[#allocation8] sm:$0xff] %v236_v60 }
 0x254   :  { %476 = shalt.err (!%p473_p6)
}
 0x255   :  { %s477_s21 = scalar_lea.hbm %s590_s4, 128 }
 0x256   :  { %p478_p7 = scmp.ne.s32.totalorder %s590_s4, %s477_s21  ;;  %p481_p8 = scmp.lt.u32.totalorder %s477_s21, %s590_s4 }
 0x258   :  { %p483_p9 = pnand %p481_p8, %p478_p7 }
 0x25a   :  { %486 = shalt.err (!%p483_p9)
}
 0x25b   :  { %249 = dma.vmem_to_hbm [thread:$0]  %s247_s17, 128, %s590_s4, [#allocation5]  }
 0x25c   :  { %491 = dma.done.wait [#allocation5], 128  }
 0x25d   :  { %492 = vsyncadd [#allocation5], 4294967168 }
 0x25e   :  { %253 = vsyncpa [#allocation4], 1 }
 0x25f   :  { %254 = vsyncpa [#allocation7], 1 }
 0x260   :  { %255 = vsyncpa [#allocation5], 1 }

</bundles_post_ra>
